<compile_context>
chip_gen: v7x
topology: tpu7x:2x2x1
jax: 0.10.0
libtpu: 0.0.40
codegen_flags: <defaults>
</compile_context>

<pallas_src>
import functools
import math

import jax
import jax.numpy as jnp
from jax import lax
from jax.experimental import pallas as pl
from jax.experimental.pallas import tpu as pltpu


def _round_up(a, b):
    return ((a + b - 1) // b) * b


def _head_kernel(x_ref, wt_ref, logits_ref, *opt_refs, k, with_sim, mask_p, p_total):
    """One (batch-tile, prototype-tile) step of the prediction head.

    x_ref      : (TB, TP, S)  prototype activations, native layout (P on sublanes,
                 spatial S on the lane axis).
    wt_ref     : (TP, Cp)     class_connection weight^T slice, activation dtype.
    logits_ref : (TB, Cp)     float32, resident (accumulated) across the P grid axis.
    sim_ref    : (TB, TP)     float32 (only when with_sim=True).
    """
    sim_ref = opt_refs[0] if with_sim else None
    p_idx = pl.program_id(1)

    x = x_ref[...]                                   # keep native dtype (bf16 stays bf16)
    tb, tp, s = x.shape

    if k == 1:
        # Fast path: a single cross-lane max (XLU), no bookkeeping.
        sim = jnp.max(x, axis=-1).astype(jnp.float32)                 # (TB, TP)
    else:
        # Iterative extract-max top-k over the lane (spatial) axis.  Each round
        # removes the *first* occurrence of the current max (torch.topk tie
        # semantics).  iota is a tiny (1,1,S) broadcast and the masking work is
        # skipped on the final round.
        iota = lax.broadcasted_iota(jnp.int32, (1, 1, s), 2)
        neg_inf = jnp.array(-jnp.inf, dtype=x.dtype)
        cur = x
        acc = jnp.zeros((tb, tp), jnp.float32)
        for i in range(k):
            m = jnp.max(cur, axis=-1)                                 # (TB, TP)
            acc = acc + m.astype(jnp.float32)
            if i + 1 < k:
                hit = cur == m[:, :, None]
                first = jnp.min(jnp.where(hit, iota, s), axis=-1, keepdims=True)
                cur = jnp.where(iota == first, neg_inf, cur)
        sim = acc * (1.0 / float(k))

    if mask_p:
        # Last prototype tile may read past P: zero those rows so their matmul
        # contribution is exactly 0 (their stores past P are masked by Pallas).
        rows = lax.broadcasted_iota(jnp.int32, (1, tp), 1) + p_idx * tp
        sim = jnp.where(rows < p_total, sim, 0.0)

    if with_sim:
        sim_ref[...] = sim

    @pl.when(p_idx == 0)
    def _():
        logits_ref[...] = jnp.zeros_like(logits_ref)

    # Linear layer (no bias): logits += sim @ weight.T   (MXU, tiny).
    logits_ref[...] += jnp.dot(sim.astype(wt_ref.dtype), wt_ref[...],
                               preferred_element_type=jnp.float32)


def _plan_tiles(B, P, S, itemsize, k, force_tb=None, force_tp=None):
    """Per-generation VMEM-aware tile selection (uses pltpu.get_tpu_info)."""
    try:
        phys = int(getattr(pltpu.get_tpu_info(), "vmem_capacity_bytes", 0)) or (64 << 20)
    except Exception:
        phys = 64 << 20                          # conservative (v7x per-TC) fallback
    vmem_limit = int(min(phys // 2, 96 << 20))   # ~64 MiB on v5e/v6e, 32 MiB on v7x
    in_buf_budget = phys // 8                    # per double-buffered input buffer
    if k > 1:
        in_buf_budget = max(1, in_buf_budget // 3)   # headroom for extract-max temporaries

    s_pad = _round_up(S, 128)                    # lane padding of the VMEM tile
    pack_b = 8                                   # float32 outputs -> 8-row sublane pack

    # Prototype-axis tile: only tile P when even a minimal batch tile at full P
    # would blow the per-buffer budget (huge P*S). Tiles are 128-aligned so the
    # optional (TB, TP) similarity output block stays lane-dense.
    TP = P
    if pack_b * _round_up(P, 8) * s_pad * itemsize > in_buf_budget and P > 128:
        tp_cap = max(1, in_buf_budget // (pack_b * s_pad * itemsize))
        TP = max(128, (tp_cap // 128) * 128)
    if force_tp is not None:
        TP = force_tp
    if TP >= P:
        TP, np_ = P, 1
    else:
        np_ = -(-P // TP)

    # Batch tile: biggest that fits the per-buffer budget.  If the whole batch
    # fits in one tile, still split it in two so both TensorCores of a 2-TC
    # chip (v7x) get work (negligible cost on 1-TC chips).
    row_bytes = _round_up(TP, 8) * s_pad * itemsize
    tb_cap = max(1, in_buf_budget // row_bytes)
    if tb_cap >= B:
        TB = B
        if B >= 2 * pack_b:
            TB = max(pack_b, (((B + 1) // 2) // pack_b) * pack_b)
    else:
        TB = min(B, max(pack_b, (tb_cap // pack_b) * pack_b))
    if force_tb is not None:
        TB = force_tb
    nb = -(-B // TB)

    # TODO(synk): if P <= 128 but S alone is enormous, add an S-axis grid with a
    # running-max accumulator (k == 1) instead of relying on vmem_limit headroom.
    return TB, nb, TP, np_, vmem_limit


def linear_class_prototype_prediction_head(
    prototype_activations,            # (B, P, H, W)
    prototype_class_identity,         # (P, C) 0/1
    incorrect_class_connection=-0.5,
    k_for_topk=1,
    return_similarity_score_to_each_prototype=False,
    _force_tb=None, _force_tp=None,   # test hooks for exercising the tiled paths
):
    B, P = prototype_activations.shape[:2]
    S = math.prod(prototype_activations.shape[2:])
    k = min(k_for_topk, S)
    C = prototype_class_identity.shape[1]
    act_dtype = prototype_activations.dtype
    itemsize = jnp.dtype(act_dtype).itemsize
    with_sim = bool(return_similarity_score_to_each_prototype)

    # Native layout, no copy: merging the trailing (H, W) dims is a free reshape.
    x3 = prototype_activations.reshape(B, P, S)

    TB, nb, TP, np_, vmem_limit = _plan_tiles(B, P, S, itemsize, k, _force_tb, _force_tp)
    mask_p = (np_ > 1) and (P % TP != 0)

    # class_connection_layer.weight^T = identity + incorrect * (1 - identity), shape (P, C).
    # Pre-cast to the activation dtype; pad classes to a lane multiple (zero columns,
    # lane-dense logits store) and prototypes to the tile multiple (zero rows).
    ident = prototype_class_identity.astype(jnp.float32)
    wt = ident + incorrect_class_connection * (1.0 - ident)
    Cp = _round_up(C, 128)
    Pw = np_ * TP
    wt = jnp.pad(wt, ((0, Pw - P), (0, Cp - C))).astype(act_dtype)

    grid = (nb, np_)
    in_specs = [
        pl.BlockSpec((TB, TP, S), lambda i, p: (i, p, 0)),   # activations (streamed)
        pl.BlockSpec((TP, Cp), lambda i, p: (p, 0)),          # weight (constant idx if np_==1)
    ]
    out_shape = [jax.ShapeDtypeStruct((B, Cp), jnp.float32)]
    out_specs = [pl.BlockSpec((TB, Cp), lambda i, p: (i, 0))]  # resident across P axis
    if with_sim:
        out_shape.append(jax.ShapeDtypeStruct((B, P), jnp.float32))
        out_specs.append(pl.BlockSpec((TB, TP), lambda i, p: (i, p)))

    outs = pl.pallas_call(
        functools.partial(_head_kernel, k=k, with_sim=with_sim, mask_p=mask_p, p_total=P),
        grid=grid,
        in_specs=in_specs,
        out_specs=tuple(out_specs),
        out_shape=tuple(out_shape),
        compiler_params=pltpu.CompilerParams(
            dimension_semantics=("parallel", "arbitrary"),
            vmem_limit_bytes=vmem_limit,
        ),
    )(x3, wt)

    result = {"logits": outs[0][:, :C]}
    if with_sim:
        result["similarity_score_to_each_prototype"] = outs[1]
    return result


def _reference(prototype_activations, prototype_class_identity, incorrect, k_for_topk):
    B, P = prototype_activations.shape[:2]
    x3 = prototype_activations.reshape(B, P, -1).astype(jnp.float32)
    k = min(k_for_topk, x3.shape[-1])
    sim = jnp.mean(lax.top_k(x3, k)[0], axis=-1)
    ident = prototype_class_identity.astype(jnp.float32)
    wt = ident + incorrect * (1.0 - ident)                     # (P, C)
    return sim @ wt, sim


if __name__ == "__main__":
    key = jax.random.PRNGKey(0)
    k1, k2 = jax.random.split(key)

    # Case 1: module-consistent small shapes (B=2, 12 prototypes, 3 classes, 7x7 spatial).
    B, P, C, H, W = 2, 12, 3, 7, 7
    acts = jax.random.normal(k1, (B, P, H, W), dtype=jnp.float32)
    ids = jax.nn.one_hot(jnp.arange(P) % C, C, dtype=jnp.float32)    # (P, C)
    for k_top in (1, 3):   # exercise the k==1 fast path and the k>1 extract-max path
        out = linear_class_prototype_prediction_head(
            acts, ids, incorrect_class_connection=-0.5, k_for_topk=k_top,
            return_similarity_score_to_each_prototype=True)
        logits = jax.block_until_ready(out["logits"])
        sim = jax.block_until_ready(out["similarity_score_to_each_prototype"])
        ref_logits, ref_sim = _reference(acts, ids, -0.5, k_top)
        assert jnp.allclose(logits, ref_logits, atol=1e-5, rtol=1e-5), f"logits mismatch k={k_top}"
        assert jnp.allclose(sim, ref_sim, atol=1e-5, rtol=1e-5), f"sim mismatch k={k_top}"

    # Case 2: exercise the batch-tiled + prototype-tiled (accumulating) grid path,
    # including a partial last prototype tile (P % TP != 0 -> in-kernel masking).
    B, P, C, H, W = 16, 200, 10, 4, 4
    acts = jax.random.normal(k2, (B, P, H, W), dtype=jnp.float32)
    ids = jax.nn.one_hot(jnp.arange(P) % C, C, dtype=jnp.float32)
    for k_top, want_sim in ((1, True), (2, True), (1, False)):
        out = linear_class_prototype_prediction_head(
            acts, ids, incorrect_class_connection=-0.5, k_for_topk=k_top,
            return_similarity_score_to_each_prototype=want_sim,
            _force_tb=8, _force_tp=128)
        logits = jax.block_until_ready(out["logits"])
        ref_logits, ref_sim = _reference(acts, ids, -0.5, k_top)
        assert jnp.allclose(logits, ref_logits, atol=1e-4, rtol=1e-4), f"tiled logits mismatch k={k_top}"
        if want_sim:
            sim = jax.block_until_ready(out["similarity_score_to_each_prototype"])
            assert jnp.allclose(sim, ref_sim, atol=1e-5, rtol=1e-5), f"tiled sim mismatch k={k_top}"

    print("KERNEL_OK")
</pallas_src>

<mosaic_0001>
module attributes {stable_mosaic.version = 11 : i64} {
  func.func @_head_kernel(%arg0: i32, %arg1: i32, %arg2: memref<2x12x49xf32, #tpu.memory_space<vmem>>, %arg3: memref<12x128xf32, #tpu.memory_space<vmem>>, %arg4: memref<2x128xf32, #tpu.memory_space<vmem>>, %arg5: memref<2x12xf32, #tpu.memory_space<vmem>>) attributes {dimension_semantics = [#tpu.dimension_semantics<parallel>, #tpu.dimension_semantics<arbitrary>], iteration_bounds = array<i64: 1, 1>, scalar_prefetch = 0 : i64, scratch_operands = 0 : i64, tpu.core_type = #tpu.core_type<tc>, window_params = [{transform_indices = @transform_0, window_bounds = array<i64: 2, 12, 49>}, {transform_indices = @transform_1, window_bounds = array<i64: 12, 128>}, {transform_indices = @transform_2, window_bounds = array<i64: 2, 128>}, {transform_indices = @transform_3, window_bounds = array<i64: 2, 12>}]} {
    %c0 = arith.constant 0 : index
    %c0_0 = arith.constant 0 : index
    %c0_1 = arith.constant 0 : index
    %0 = vector.load %arg2[%c0, %c0_0, %c0_1] : memref<2x12x49xf32, #tpu.memory_space<vmem>>, vector<2x12x49xf32>
    %cst = arith.constant dense<0xFF800000> : vector<2x12xf32>
    %1 = vector.multi_reduction <maximumf>, %0, %cst [2] : vector<2x12x49xf32> to vector<2x12xf32>
    %c0_2 = arith.constant 0 : index
    %c0_3 = arith.constant 0 : index
    %2 = vector.load %arg5[%c0_2, %c0_3] : memref<2x12xf32, #tpu.memory_space<vmem>>, vector<2x12xf32>
    tpu.vector_store %arg5[%c0_2, %c0_3], %1 {strides = array<i32>} : memref<2x12xf32, #tpu.memory_space<vmem>>, vector<2x12xf32>,
    %c0_i32 = arith.constant 0 : i32
    %3 = arith.cmpi eq, %arg1, %c0_i32 : i32
    %4 = arith.extui %3 : i1 to i32
    %c0_i32_4 = arith.constant 0 : i32
    %5 = arith.cmpi ne, %4, %c0_i32_4 : i32
    scf.if %5 {
      %cst_12 = arith.constant 0.000000e+00 : f32
      %11 = vector.broadcast %cst_12 : f32 to vector<2x128xf32>
      %c0_13 = arith.constant 0 : index
      %c0_14 = arith.constant 0 : index
      %12 = vector.load %arg4[%c0_13, %c0_14] : memref<2x128xf32, #tpu.memory_space<vmem>>, vector<2x128xf32>
      tpu.vector_store %arg4[%c0_13, %c0_14], %11 {strides = array<i32>} : memref<2x128xf32, #tpu.memory_space<vmem>>, vector<2x128xf32>,
    } else {
    }
    %c0_5 = arith.constant 0 : index
    %c0_6 = arith.constant 0 : index
    %6 = vector.load %arg4[%c0_5, %c0_6] : memref<2x128xf32, #tpu.memory_space<vmem>>, vector<2x128xf32>
    %c0_7 = arith.constant 0 : index
    %c0_8 = arith.constant 0 : index
    %7 = vector.load %arg3[%c0_7, %c0_8] : memref<12x128xf32, #tpu.memory_space<vmem>>, vector<12x128xf32>
    %cst_9 = arith.constant dense<0.000000e+00> : vector<2x128xf32>
    %8 = tpu.matmul %1, %7, %cst_9 {dimension_numbers = #tpu.dot_dimension_numbers<[1], [0], [0], [1], [0, 0, 1, 1], [], []>} : vector<2x12xf32>, vector<12x128xf32>, vector<2x128xf32> -> vector<2x128xf32>
    %9 = arith.addf %6, %8 : vector<2x128xf32>
    %c0_10 = arith.constant 0 : index
    %c0_11 = arith.constant 0 : index
    %10 = vector.load %arg4[%c0_10, %c0_11] : memref<2x128xf32, #tpu.memory_space<vmem>>, vector<2x128xf32>
    tpu.vector_store %arg4[%c0_10, %c0_11], %9 {strides = array<i32>} : memref<2x128xf32, #tpu.memory_space<vmem>>, vector<2x128xf32>,
    return
  }
  func.func @transform_0(%arg0: i32, %arg1: i32) -> (i32, i32, i32) {
    %c0_i32 = arith.constant 0 : i32
    %c0_i32_0 = arith.constant 0 : i32
    return %arg0, %arg1, %c0_i32 : i32, i32, i32
  }
  func.func @transform_1(%arg0: i32, %arg1: i32) -> (i32, i32) {
    %c0_i32 = arith.constant 0 : i32
    %c0_i32_0 = arith.constant 0 : i32
    return %arg1, %c0_i32 : i32, i32
  }
  func.func @transform_2(%arg0: i32, %arg1: i32) -> (i32, i32) {
    %c0_i32 = arith.constant 0 : i32
    %c0_i32_0 = arith.constant 0 : i32
    return %arg0, %c0_i32 : i32, i32
  }
  func.func @transform_3(%arg0: i32, %arg1: i32) -> (i32, i32) {
    %c0_i32 = arith.constant 0 : i32
    return %arg0, %arg1 : i32, i32
  }
}

</mosaic_0001>

<bundles_post_ra>
// kernel: tpu_custom_call.1
= control target key start
LH: loop header
LB: loop body
LE: loop exit
PB: predicated region body
PF: predicated region fallthrough
CT: control target
= control target key end

     0   :  { %9 = vsyncpa [#allocation3], 0  ;;  %vm19_vm0 = vcmask 400384   ;;  %vm23_vm1 = vcmask 396288   ;;  %s317_s0 = inlined_call_operand.vmem [shape: f32[2,12,49], index: 0, kind: input, shape index: {}]   ;;  %s318_s1 = inlined_call_operand.vmem [shape: f32[12,128], index: 1, kind: input, shape index: {}]   ;;  %s319_s2 = inlined_call_operand.hbm [shape: f32[2,128], index: 2, kind: output, shape index: {0}]   ;;  %s320_s3 = inlined_call_operand.hbm [shape: f32[2,12], index: 3, kind: output, shape index: {1}]  }
   0x1   :  { %v17_v0 = vld [vmem:[%s317_s0 + $0x10] sm:$0xff]  ;;  %v15_v1 = vld [vmem:[%s317_s0] sm:$0xff]  ;;  %v18_v2 = vld [vmem:[%s317_s0 + $0x18] sm:$0xf] }
   0x2   :  { %v27_v3 = vsel %vm19_vm0, %v17_v0, -inf  ;;  %v20_v4 = vsel %vm19_vm0, %v15_v1, -inf  ;;  %v16_v5 = vld [vmem:[%s317_s0 + $0x8] sm:$0xf] }
   0x3   :  { %28 = vmax.xlane.f32.xlu1 %v27_v3  ;;  %21 = vmax.xlane.f32.xlu0 %v20_v4 }
   0x4   :  { %10 = vsyncpa [#allocation5], 0  ;;  %v30_v6 = vsel %vm23_vm1, %v18_v2, -inf  ;;  %v24_v7 = vsel %vm23_vm1, %v16_v5, -inf  ;;  %v70_v8 = vld [vmem:[%s318_s1] sm:$0xff]  ;;  %vm75_vm2 = vcmask 1043456   ;;  %v37_v13 = vlaneseq }
   0x5   :  { %v71_v9 = vld [vmem:[%s318_s1 + $0x8] sm:$0xf]  ;;  %v249_v11 = vmov 0.0|0.0   ;;  %vm250_vm3 = vmmov 1   ;;  %v251_v12 = vmov 0.0   ;;  %vm252_vm5 = vmmov 0  }
   0x6   :  { %v192_v10 = vpack.c.bf16 %v71_v9, %v70_v8  ;;  %191 = vmatprep.subr.bf16.mxu0 %v249_v11  ;;  %vm193_vm4 = vmpackc.low %vm75_vm2, %vm250_vm3  ;;  %68 = vst [vmem:[#allocation2] sm:$0x3] %v251_v12  ;;  %188 = vmatprep.mubr.msk.f32.mxu0 %vm252_vm5, %v251_v12  ;;  %v38_v14 = vand.u32 127, %v37_v13  ;;  %v40_v15 = vshrl.u32 %v37_v13, 7  ;;  %vm48_vm6 = vcmask 130112   ;;  %s253_s0 = smov [#allocation4]  }
   0x7   :  { %31 = vmax.xlane.f32.xlu1 %v30_v6  ;;  %25 = vmax.xlane.f32.xlu0 %v24_v7  ;;  %vm59_vm7 = vcmask 1041409   ;;  %vm72_vm8 = vcmask 97280   ;;  %vm62_vm9 = vcmask 91136   ;;  %s167_s1 = sshll.u32 %s253_s0, 4  ;;  %s168_s1 = int_to_ptr.vmem [resolvable:$true] %s167_s1 }
   0x8   :  { %194 = vmatpush3.bf16.msk.msra.mxu0 %vm193_vm4, %v192_v10  ;;  %v43_v16 = vadd.s32 4294967288, %v38_v14  ;;  %v41_v19 = vsub.s32 %v38_v14, %v40_v15  ;;  %s201_s24 = scalar_lea.vmem %s168_s1, 32  ;;  %p206_p1 = scmp.lt.s32.totalorder %s168_s1, %s168_s1 }
   0x9   :  { %p202_p0 = scmp.ne.s32.totalorder %s168_s1, %s201_s24  ;;  %p207_p2 = scmp.lt.s32.totalorder %s201_s24, %s201_s24 }
   0xa   :  { %v46_v20 = vsub.s32 %v43_v16, %v40_v15 }
   0xb   :  { %p208_p3 = por %p207_p2, %p206_p1 }
   0xd   :  { %p209_p4 = pnand %p208_p3, %p202_p0 }
  0x90   :  { %v29_v17 = vpop.xlane.xlu1 %28  ;;  %v22_v18 = vpop.xlane.xlu0 %21 }
  0x91   :  { %v53_v23 = vrot.slane %v29_v17, %v41_v19  ;;  %v42_v24 = vrot.slane %v22_v18, %v41_v19 }
  0x94   :  { %v32_v21 = vpop.xlane.xlu1 %31  ;;  %v26_v22 = vpop.xlane.xlu0 %25 }
  0x95   :  { %v57_v25 = vrot.slane %v32_v21, %v46_v20  ;;  %v47_v26 = vrot.slane %v26_v22, %v46_v20 }
  0x97   :  { %v58_v27 = vsel %vm48_vm6, %v57_v25, %v53_v23  ;;  %v49_v28 = vsel %vm48_vm6, %v47_v26, %v42_v24 }
  0x98   :  { %v60_v29 = vsel %vm59_vm7, %v58_v27, %v49_v28 }
  0x99   :  { %189 = vmatmul.mubr.msk.f32.vlgmr.msra.gmra.mrb[0].mxu0 %vm72_vm8, %v60_v29  ;;  %63 = vst.msk [vmem:[#allocation4] sm:$0x3] %vm62_vm9, %v60_v29 }
  0x9a   :  { %212 = shalt.err (!%p209_p4)
}
  0x9b   :  { %s213_s27 = scalar_lea.hbm %s320_s3, 32 }
  0x9c   :  { %p214_p5 = scmp.ne.s32.totalorder %s320_s3, %s213_s27  ;;  %p217_p6 = scmp.lt.u32.totalorder %s213_s27, %s320_s3 }
  0x9e   :  { %p219_p7 = pnand %p217_p6, %p214_p5 }
  0xa0   :  { %222 = shalt.err (!%p219_p7)
}
  0xa1   :  { %170 = dma.vmem_to_hbm [thread:$0]  %s168_s1, 32, %s320_s3, [#allocation5]   ;;  %v69_v30 = vld [vmem:[#allocation2] sm:$0x3] }
  0xa2   :  { %s254_s7 = smov [#allocation2]  }
  0xa3   :  { %s157_s8 = sshll.u32 %s254_s7, 4  ;;  %s158_s8 = int_to_ptr.vmem [resolvable:$true] %s157_s8 }
  0xa4   :  { %s223_s9 = scalar_lea.vmem %s158_s8, 32  ;;  %p228_p9 = scmp.lt.s32.totalorder %s158_s8, %s158_s8 }
  0xa5   :  { %p224_p8 = scmp.ne.s32.totalorder %s158_s8, %s223_s9  ;;  %p229_p10 = scmp.lt.s32.totalorder %s223_s9, %s223_s9 }
  0xa7   :  { %p230_p11 = por %p229_p10, %p228_p9 }
  0xa9   :  { %p231_p12 = pnand %p230_p11, %p224_p8 }
 0x16c   :  { %v145_v31 = vpop.f32.mrb[0].mxu0 }
 0x16d   :  { %v149_v32 = vadd.f32 %v145_v31, %v69_v30  ;;  %v190_v33 = vpop.f32.mrb[1].mxu0 }
 0x16f   :  { %150 = vst [vmem:[#allocation2] sm:$0x3] %v149_v32 }
 0x170   :  { %234 = shalt.err (!%p231_p12)
}
 0x171   :  { %s235_s12 = scalar_lea.hbm %s319_s2, 32 }
 0x172   :  { %p236_p13 = scmp.ne.s32.totalorder %s319_s2, %s235_s12  ;;  %p239_p0 = scmp.lt.u32.totalorder %s235_s12, %s319_s2 }
 0x174   :  { %p241_p1 = pnand %p239_p0, %p236_p13 }
 0x176   :  { %244 = shalt.err (!%p241_p1)
}
 0x177   :  { %160 = dma.vmem_to_hbm [thread:$0]  %s158_s8, 32, %s319_s2, [#allocation3]  }
 0x178   :  { %245 = dma.done.wait [#allocation3], 32  }
 0x179   :  { %246 = vsyncadd [#allocation3], 4294967264 }
 0x17a   :  { %247 = dma.done.wait [#allocation5], 32  }
 0x17b   :  { %248 = vsyncadd [#allocation5], 4294967264 }
 0x17c   :  { %177 = vsyncpa [#allocation3], 1 }
 0x17d   :  { %178 = vsyncpa [#allocation5], 1 }

</bundles_post_ra>
